<compile_context>
chip_gen: v5e
topology: v5e:2x2
jax: 0.10.0
libtpu: 0.0.40
codegen_flags: <defaults>
</compile_context>

<pallas_src>
import jax
import jax.numpy as jnp
from jax import lax
from jax.experimental import pallas as pl
from jax.experimental.pallas import tpu as pltpu


def _round_up(a: int, b: int) -> int:
    return (a + b - 1) // b * b


def _proj_single_kernel(x_ref, w_ref, a_ref, o_ref):
    """out[m-tile] = x[m-tile] @ w + (bias [+ positions]).  No K grid axis."""
    o_ref[...] = (
        jnp.dot(x_ref[...], w_ref[...], preferred_element_type=jnp.float32)
        + a_ref[...]
    ).astype(o_ref.dtype)


def _proj_multi_kernel(x_ref, w_ref, a_ref, o_ref, acc_ref):
    """Fallback for huge K: f32 accumulate over the innermost K grid axis."""
    k = pl.program_id(1)
    prod = jnp.dot(x_ref[...], w_ref[...], preferred_element_type=jnp.float32)

    @pl.when(k == 0)
    def _():
        acc_ref[...] = prod            # init-by-assign, no zero-fill pass

    @pl.when(k != 0)
    def _():
        acc_ref[...] += prod

    @pl.when(k == pl.num_programs(1) - 1)
    def _():
        o_ref[...] = (acc_ref[...] + a_ref[...]).astype(o_ref.dtype)


def patch_embedding(x, conv_w, conv_b, cls_token, positions, patch_size, *,
                    compute_dtype=jnp.bfloat16, tm=256, tk=512,
                    weight_vmem_budget_bytes=8 << 20):
    """Forward pass of PatchEmbedding.  x: (B, C, T, H, W) like nn.Conv3d."""
    B, C, T, H, W = x.shape
    p = patch_size
    Tp, Hp, Wp = T // p, H // p, W // p
    HW = Hp * Wp
    E = conv_w.shape[0]
    K = C * p * p * p
    out_dtype = x.dtype

    # ---- patchify + temporal sum (mean folded into the weight below). ----
    # Cast to compute_dtype immediately after the reduce so the dominant HBM
    # intermediate (xs) is materialized in bf16, not f32.
    xp = x.reshape(B, C, Tp, p, Hp, p, Wp, p)
    xp = xp.transpose(0, 2, 4, 6, 1, 3, 5, 7)          # (B, Tp, Hp, Wp, C, p, p, p)
    xs = xp.reshape(B, Tp, HW, K).sum(axis=1).astype(compute_dtype)   # (B, HW, K)
    xs = xs.reshape(B * HW, K)                         # flatten rows -> big M

    # ---- flatten projection weight; fold the 1/Tp (mean) scale into it. ----
    w_flat = conv_w.reshape(E, K).T * (1.0 / Tp)       # (K, E), f32

    # ---- pad to MXU / vreg friendly shapes. ----
    M = B * HW
    E_pad = _round_up(E, 128)                          # lane-dense output stores
    K_pad = _round_up(K, 128)

    cs = jnp.dtype(compute_dtype).itemsize
    if K_pad * E_pad * cs <= weight_vmem_budget_bytes:
        tk = K_pad                                     # weight resident, nk == 1
    else:
        tk = min(tk, K_pad)
        K_pad = _round_up(K_pad, tk)
    nk = K_pad // tk

    # m tile: big rows for MXU occupancy, but keep nm >= 2 when M > 8 so the
    # parallel axis can be split across the two TensorCores on v7x.
    if M <= 8:
        tm = _round_up(max(M, 1), 8)
    else:
        tm = min(tm, _round_up(-(-M // 2), 8))
    M_pad = _round_up(M, tm)
    nm = M_pad // tm

    if (M_pad, K_pad) != (M, K):
        xs = jnp.pad(xs, ((0, M_pad - M), (0, K_pad - K)))
    w_pad = jnp.pad(w_flat, ((0, K_pad - K), (0, E_pad - E))).astype(compute_dtype)

    # ---- fold bias + patch-token positions into one f32 epilogue addend. ----
    b_row = jnp.pad(conv_b.astype(jnp.float32), (0, E_pad - E))[None, :]       # (1, E_pad)
    pos_pad = jnp.pad(positions[1:].astype(jnp.float32), ((0, 0), (0, E_pad - E)))
    if tm % HW == 0:                      # each m tile covers whole batches
        addend = jnp.tile(pos_pad, (tm // HW, 1)) + b_row        # (tm, E_pad)
        ta, n_a, fold_pos = tm, 1, True
    elif HW % tm == 0:                    # each m tile is a slice of one batch
        addend = pos_pad + b_row                                  # (HW, E_pad)
        ta, n_a, fold_pos = tm, HW // tm, True
    else:                                 # fallback: bias only, positions in wrapper
        addend = b_row                                            # (1, E_pad)
        ta, n_a, fold_pos = 1, 1, False

    if n_a == 1:
        a_map_1 = lambda m: (0, 0)
        a_map_2 = lambda m, k: (0, 0)
    else:
        a_map_1 = lambda m: (m % n_a, 0)
        a_map_2 = lambda m, k: (m % n_a, 0)

    if nk == 1:
        kernel = _proj_single_kernel
        grid = (nm,)
        in_specs = [
            pl.BlockSpec((tm, K_pad), lambda m: (m, 0)),
            pl.BlockSpec((K_pad, E_pad), lambda m: (0, 0)),   # constant -> resident
            pl.BlockSpec((ta, E_pad), a_map_1),
        ]
        out_specs = pl.BlockSpec((tm, E_pad), lambda m: (m, 0))
        scratch = []
        dims = ("parallel",)
    else:
        kernel = _proj_multi_kernel
        grid = (nm, nk)                                    # K reduction innermost
        in_specs = [
            pl.BlockSpec((tm, tk), lambda m, k: (m, k)),
            pl.BlockSpec((tk, E_pad), lambda m, k: (k, 0)),
            pl.BlockSpec((ta, E_pad), a_map_2),
        ]
        out_specs = pl.BlockSpec((tm, E_pad), lambda m, k: (m, 0))
        scratch = [pltpu.VMEM((tm, E_pad), jnp.float32)]
        dims = ("parallel", "arbitrary")

    # VMEM budget (double-buffered inputs/outputs + accumulator); only pass an
    # explicit limit when the plan is big enough to need it (v5e default 16 MiB,
    # v7x physical 64 MiB).
    out_isz = jnp.dtype(out_dtype).itemsize
    est = 2 * (tm * tk * cs + tk * E_pad * cs + ta * E_pad * 4 + tm * E_pad * out_isz)
    if nk > 1:
        est += tm * E_pad * 4
    vmem_limit = None
    if est > (12 << 20):
        vmem_limit = min(int(est * 3 // 2) + (2 << 20), 64 << 20)

    out = pl.pallas_call(
        kernel,
        out_shape=jax.ShapeDtypeStruct((M_pad, E_pad), out_dtype),
        grid_spec=pltpu.PrefetchScalarGridSpec(
            num_scalar_prefetch=0,
            grid=grid,
            in_specs=in_specs,
            out_specs=out_specs,
            scratch_shapes=scratch,
        ),
        compiler_params=pltpu.CompilerParams(
            dimension_semantics=dims, vmem_limit_bytes=vmem_limit),
    )(xs, w_pad, addend)

    out = out[:M, :E].reshape(B, HW, E)
    if not fold_pos:
        out = out + positions[None, 1:, :].astype(out_dtype)

    # ---- cls token (+ its positional embedding) prepended in the wrapper. ----
    cls = (cls_token.astype(jnp.float32)
           + positions[0:1].astype(jnp.float32)).astype(out_dtype)   # (1, 1, E)
    cls = jnp.broadcast_to(cls.reshape(1, 1, E), (B, 1, E))
    return jnp.concatenate([cls, out], axis=1)


def patch_embedding_ref(x, conv_w, conv_b, cls_token, positions, p):
    """Pure-JAX reference matching the PyTorch forward semantics."""
    y = lax.conv_general_dilated(
        x, conv_w, window_strides=(p, p, p), padding="VALID",
        dimension_numbers=("NCDHW", "OIDHW", "NCDHW"),
        precision=lax.Precision.HIGHEST)
    y = y + conv_b[None, :, None, None, None]          # (B, E, T', H', W')
    B, E, Tp, Hp, Wp = y.shape
    # Rearrange 'b c t h w -> b (h w) c t', then mean over t.
    y = y.transpose(0, 3, 4, 1, 2).reshape(B, Hp * Wp, E, Tp).mean(axis=-1)
    cls = jnp.broadcast_to(cls_token, (B, 1, E))
    y = jnp.concatenate([cls, y], axis=1)
    return y + positions[None, :, :]


if __name__ == "__main__":
    def make_inputs(B, C, T, H, W, p, E, seed=0):
        num_patches = (H // p) * (W // p)
        key = jax.random.PRNGKey(seed)
        kx, kw, kb, kc, kp = jax.random.split(key, 5)
        x = jax.random.normal(kx, (B, C, T, H, W), dtype=jnp.float32)
        conv_w = jax.random.normal(kw, (E, C, p, p, p), dtype=jnp.float32) * 0.02
        conv_b = jax.random.normal(kb, (E,), dtype=jnp.float32) * 0.02
        cls_token = jax.random.normal(kc, (1, 1, E), dtype=jnp.float32)
        positions = jax.random.normal(kp, (num_patches + 1, E), dtype=jnp.float32)
        return x, conv_w, conv_b, cls_token, positions

    # Primary small config: in_channels=4, patch_size=4, emd_size=32, img=16.
    B, C, T, H, W, p, E = 2, 4, 8, 16, 16, 4, 32
    num_patches = (H // p) * (W // p)
    args = make_inputs(B, C, T, H, W, p, E, seed=0)
    ref = patch_embedding_ref(*args, p)

    # Exact f32 path (single-K kernel, positions folded, nm=2).
    out_f32 = jax.block_until_ready(
        patch_embedding(*args, p, compute_dtype=jnp.float32))
    assert out_f32.shape == (B, num_patches + 1, E), out_f32.shape
    assert jnp.allclose(out_f32, ref, rtol=1e-3, atol=1e-3), (
        float(jnp.max(jnp.abs(out_f32 - ref))))

    # Default bf16 MXU path (f32 accumulation) -- looser tolerance.
    out_bf16 = jax.block_until_ready(patch_embedding(*args, p))
    assert jnp.allclose(out_bf16, ref, rtol=3e-2, atol=3e-2), (
        float(jnp.max(jnp.abs(out_bf16 - ref))))

    # Extra configs exercising M padding, K padding, and the position fold.
    for cfg in [(1, 3, 8, 16, 16, 8, 32),   # M=4 -> pad to 8; K=1536
                (2, 3, 8, 16, 16, 4, 32)]:  # K=192 -> padded to 256
        a2 = make_inputs(*cfg, seed=1)
        p2 = cfg[5]
        r2 = patch_embedding_ref(*a2, p2)
        o2 = jax.block_until_ready(
            patch_embedding(*a2, p2, compute_dtype=jnp.float32))
        assert o2.shape == r2.shape, (o2.shape, r2.shape)
        assert jnp.allclose(o2, r2, rtol=1e-3, atol=1e-3), (
            float(jnp.max(jnp.abs(o2 - r2))))

    # Force the multi-K (nk>1) fallback kernel by shrinking the weight budget.
    a3 = make_inputs(1, 3, 8, 16, 16, 8, 32, seed=2)   # K=1536 -> nk=3 at tk=512
    r3 = patch_embedding_ref(*a3, 8)
    o3 = jax.block_until_ready(
        patch_embedding(*a3, 8, compute_dtype=jnp.float32,
                        weight_vmem_budget_bytes=1))
    assert jnp.allclose(o3, r3, rtol=1e-3, atol=1e-3), (
        float(jnp.max(jnp.abs(o3 - r3))))

    print("KERNEL_OK")
</pallas_src>

<mosaic_0001>
module attributes {stable_mosaic.version = 11 : i64} {
  func.func @_proj_single_kernel(%arg0: i32, %arg1: memref<16x256xf32, #tpu.memory_space<vmem>>, %arg2: memref<256x128xf32, #tpu.memory_space<vmem>>, %arg3: memref<16x128xf32, #tpu.memory_space<vmem>>, %arg4: memref<16x128xf32, #tpu.memory_space<vmem>>) attributes {dimension_semantics = [#tpu.dimension_semantics<parallel>], iteration_bounds = array<i64: 2>, scalar_prefetch = 0 : i64, scratch_operands = 0 : i64, tpu.core_type = #tpu.core_type<tc>, window_params = [{transform_indices = @transform_0, window_bounds = array<i64: 16, 256>}, {pipeline_mode = #tpu.pipeline_mode<synchronous>, transform_indices = @transform_1, window_bounds = array<i64: 256, 128>}, {pipeline_mode = #tpu.pipeline_mode<synchronous>, transform_indices = @transform_2, window_bounds = array<i64: 16, 128>}, {transform_indices = @transform_3, window_bounds = array<i64: 16, 128>}]} {
    %c0 = arith.constant 0 : index
    %c0_0 = arith.constant 0 : index
    %0 = vector.load %arg1[%c0, %c0_0] : memref<16x256xf32, #tpu.memory_space<vmem>>, vector<16x256xf32>
    %c0_1 = arith.constant 0 : index
    %c0_2 = arith.constant 0 : index
    %1 = vector.load %arg2[%c0_1, %c0_2] : memref<256x128xf32, #tpu.memory_space<vmem>>, vector<256x128xf32>
    %cst = arith.constant dense<0.000000e+00> : vector<16x128xf32>
    %2 = tpu.matmul %0, %1, %cst {dimension_numbers = #tpu.dot_dimension_numbers<[1], [0], [0], [1], [0, 0, 1, 1], [], []>} : vector<16x256xf32>, vector<256x128xf32>, vector<16x128xf32> -> vector<16x128xf32>
    %c0_3 = arith.constant 0 : index
    %c0_4 = arith.constant 0 : index
    %3 = vector.load %arg3[%c0_3, %c0_4] : memref<16x128xf32, #tpu.memory_space<vmem>>, vector<16x128xf32>
    %4 = arith.addf %2, %3 : vector<16x128xf32>
    %c0_5 = arith.constant 0 : index
    %c0_6 = arith.constant 0 : index
    %5 = vector.load %arg4[%c0_5, %c0_6] : memref<16x128xf32, #tpu.memory_space<vmem>>, vector<16x128xf32>
    tpu.vector_store %arg4[%c0_5, %c0_6], %4 {strides = array<i32>} : memref<16x128xf32, #tpu.memory_space<vmem>>, vector<16x128xf32>,
    return
  }
  func.func @transform_0(%arg0: i32) -> (i32, i32) {
    %c0_i32 = arith.constant 0 : i32
    %c0_i32_0 = arith.constant 0 : i32
    return %arg0, %c0_i32 : i32, i32
  }
  func.func @transform_1(%arg0: i32) -> (i32, i32) {
    %c0_i32 = arith.constant 0 : i32
    %c0_i32_0 = arith.constant 0 : i32
    %c0_i32_1 = arith.constant 0 : i32
    return %c0_i32, %c0_i32_0 : i32, i32
  }
  func.func @transform_2(%arg0: i32) -> (i32, i32) {
    %c0_i32 = arith.constant 0 : i32
    %c0_i32_0 = arith.constant 0 : i32
    %c0_i32_1 = arith.constant 0 : i32
    return %c0_i32, %c0_i32_0 : i32, i32
  }
  func.func @transform_3(%arg0: i32) -> (i32, i32) {
    %c0_i32 = arith.constant 0 : i32
    %c0_i32_0 = arith.constant 0 : i32
    return %arg0, %c0_i32 : i32, i32
  }
}

</mosaic_0001>

<bundles_post_ra>
// kernel: tpu_custom_call.1
= control target key start
LH: loop header
LB: loop body
LE: loop exit
PB: predicated region body
PF: predicated region fallthrough
CT: control target
= control target key end

     0   :  { %8 = vsyncpa [#allocation3], 0  ;;  %s886_s0 = inlined_call_operand.hbm [shape: f32[32,256], index: 0, kind: input, shape index: {}]   ;;  %s887_s1 = inlined_call_operand.hbm [shape: f32[256,128], index: 1, kind: input, shape index: {}]   ;;  %s888_s2 = inlined_call_operand.hbm [shape: f32[16,128], index: 2, kind: input, shape index: {}]   ;;  %s889_s3 = inlined_call_operand.hbm [shape: f32[32,128], index: 3, kind: output, shape index: {}]  }
   0x1   :  { %10 = vsyncpa [#allocation3 + $0x1], 0 }
   0x2   :  { %11 = vsyncpa [#allocation6], 0 }
   0x3   :  { %12 = vsyncpa [#allocation4], 0 }
   0x4   :  { %14 = vsyncpa [#allocation4 + $0x1], 0  ;;  %s738_s12 = smov 0   ;;  %s740_s13 = smov 0  }
   0x5   :  { %s742_s14 = smov 0   ;;  %s744_s15 = smov 0  }
   0x6 LB: > { %s759_s16 = sadd.s32 4294967295, %s708_s15   ;;  %s421_s17 = sadd.s32 4294967294, %s708_s15   ;;  %s708_s15 = sphi %s744_s15, %s899_s15   ;;  %s704_s14 = sphi %s742_s14, %s898_s14   ;;  %s700_s13 = sphi %s740_s13, %s897_s13   ;;  %s696_s12 = sphi %s738_s12, %s896_s12  }
   0x7   : > { %p40_p0 = scmp.ne.s32.totalorder %s700_s13, %s696_s12  ;;  %p41_p1 = scmp.eq.s32.totalorder %s759_s16, 0 }
   0x8   : > { %p106_p2 = scmp.eq.s32.totalorder %s759_s16, 1  ;;  %p112_p3 = scmp.eq.s32.totalorder %s421_s17, 1 }
   0x9   : > { %p768_p4 = por %p41_p1, %p40_p0  ;;  %p422_p5 = scmp.ge.s32.totalorder %s708_s15, 1 }
   0xa   : > { %p773_p6 = por %p112_p3, %p40_p0  ;;  %p119_p7 = scmp.lt.s32.totalorder %s708_s15, 3 }
   0xb   : > { %s130_s22 = sshll.u32 %s887_s1, 4  ;;  %s710_s24 = smov [#allocation5]   ;;  %s131_s22 = int_to_ptr.hbm [resolvable:$true] %s130_s22 }
   0xc   : > { %p781_p8 = pnand %p422_p5, %p119_p7  ;;  %s132_s25 = sshll.u32 %s710_s24, 4  ;;  %s133_s25 = int_to_ptr.vmem [resolvable:$true] %s132_s25 }
   0xd   : > { %s144_s28 = sshll.u32 %s888_s2, 4  ;;  %s711_s29 = smov 128   ;;  %s145_s28 = int_to_ptr.hbm [resolvable:$true] %s144_s28 }
   0xe   : > { %p487_p9 = pneg %p781_p8  ;;  %s712_s30 = smov 8  }
   0xf   : > { %s713_s4 = smov [#allocation7]   ;;  %s794_s6 = sadd.s32 1, %s708_s15  }
  0x10   : > { %p488_p10 = pnand %p487_p9, %p41_p1  ;;  %s146_s5 = sshll.u32 %s713_s4, 4  ;;  %s147_s5 = int_to_ptr.vmem [resolvable:$true] %s146_s5 }
  0x11   : > { %s27_s7 = sadd.s32 1, %s704_s14  ;;  %s24_s8 = ssub.s32 %s708_s15, %s794_s6 }
  0x12   : > { %490 = dma.hbm_to_vmem [thread:$0]  (!%p488_p10), %s131_s22, 4096, %s133_s25, [#allocation6], %s711_s29, %s711_s29, %s712_s30  }
  0x13   : > { %493 = dma.hbm_to_vmem [thread:$0]  (!%p488_p10), %s145_s28, 256, %s147_s5, [#allocation6], %s711_s29, %s711_s29, %s712_s30  }
  0x14   : > { %p34_p12 = scmp.ne.s32.totalorder %s704_s14, %s700_s13  ;;  %p25_p13 = scmp.eq.s32.totalorder %s24_s8, 0 }
  0x15   : > { %p35_p0 = scmp.eq.s32.totalorder %s708_s15, 0  ;;  %p504_p5 = scmp.lt.s32.totalorder %s708_s15, 2 }
  0x16   : > { %p804_p3 = por %p106_p2, %p34_p12  ;;  %s160_s11 = sand.u32 1, %s704_s14  }
  0x17   : > { %s810_s10 = scalar_select %p25_p13, %s704_s14, %s27_s7  }
  0x18   : > { %p36_p7 = por %p35_p0, %p34_p12  ;;  %s426_s17 = sshll.u32 %s160_s11, 5 }
  0x19   : > { %s441_s20 = sshll.u32 %s708_s15, 5  ;;  %s164_s25 = scalar_lea.vmem [#allocation2], %s426_s17 }
  0x1a   : > { %s170_s24 = scalar_lea.hbm %s886_s0, %s441_s20  ;;  %s173_s26 = sshll.u32 %s164_s25, 4  ;;  %s174_s26 = int_to_ptr.vmem [resolvable:$true] %s173_s26 }
  0x1b   : > { %s171_s27 = sshll.u32 %s170_s24, 4  ;;  %p817_p2 = pnand %p504_p5, %p36_p7  ;;  %s172_s27 = int_to_ptr.hbm [resolvable:$true] %s171_s27 }
  0x1c   : > { %s161_s29 = scalar_lea.sflag [#allocation3], %s160_s11  ;;  %s608_s30 = sshra.s32 %s172_s27, 4  ;;  %s609_s30 = int_to_ptr.hbm [resolvable:$true] %s608_s30 }
  0x1d   : > { %s610_s4 = scalar_lea.hbm %s609_s30, 32  ;;  %p612_p10 = pneg %p817_p2 }
  0x1e   : > { %p611_p9 = scmp.ne.s32.totalorder %s609_s30, %s610_s4  ;;  %s615_s8 = scalar_lea.hbm %s886_s0, 64 }
  0x1f   : > { %p616_p0 = scmp.lt.s32.totalorder %s609_s30, %s886_s0  ;;  %p617_p5 = scmp.lt.s32.totalorder %s615_s8, %s610_s4 }
  0x20   : > { %p613_p12 = pnand %p612_p10, %p611_p9 }
  0x21   : > { %p618_p7 = por %p617_p5, %p616_p0 }
  0x22   : > { %p614_p13 = pneg %p613_p12 }
  0x24   : > { %p619_p11 = pnand %p618_p7, %p614_p13 }
  0x26   : > { %622 = shalt.err (!%p619_p11)
}
  0x27   : > { %s714_s11 = smov 256   ;;  %s715_s21 = smov 16  }
  0x28   : > { %497 = dma.hbm_to_vmem [thread:$0]  (!%p817_p2), %s172_s27, 512, %s174_s26, %s161_s29, %s714_s11, %s714_s11, %s715_s21  }
  0x29   : > { %185 = sbr.rel (%p781_p8) target bundleno = 221 (0xdd), region = 32  ;;  %s834_s22 = sand.u32 (!%p781_p8), 1, %s700_s13  }
  0x2a   : > { %s431_s24 = sshll.u32 (!%p781_p8), %s834_s22, 5  ;;  %s188_s25 = scalar_lea.sflag (!%p781_p8), [#allocation3], %s834_s22 }
  0x2b   : > { %s838_s30 = scalar_lea.vmem (!%p781_p8), [#allocation2], %s431_s24 }
  0x2e   : > { %683 = dma.done.wait (%p768_p4), %s188_s25, 512  }
  0x2f   : > { %685 = vsyncadd (%p768_p4), %s188_s25, 4294966784 }
  0x30   : > { %687 = dma.done.wait (%p41_p1), [#allocation6], 4352  }
  0x31   : > { %689 = vsyncadd (%p41_p1), [#allocation6], 4294962944  ;;  %v246_v0 = vld [vmem:[#allocation5 + $0x78] sm:$0xff]  ;;  %v245_v1 = vld [vmem:[#allocation5 + $0x70] sm:$0xff]  ;;  %s434_s18 = sshll.u32 %s834_s22, 4  ;;  %s442_s23 = sshll.u32 %s759_s16, 4 }
  0x32   : > { %v262_v2 = vld [vmem:[#allocation5 + $0xf8] sm:$0xff]  ;;  %443 = vmatpush.msra.mxu2 %v246_v0  ;;  %v261_v3 = vld [vmem:[#allocation5 + $0xf0] sm:$0xff]  ;;  %v244_v4 = vld [vmem:[#allocation5 + $0x68] sm:$0xff]  ;;  %265 = vmatpush.msra.mxu0 %v246_v0  ;;  %s325_s28 = scalar_lea.hbm %s889_s3, %s442_s23  ;;  %s224_s29 = scalar_lea.vmem [#allocation8], %s434_s18 }
  0x33   : > { %459 = vmatpush.msra.mxu3 %v262_v2  ;;  %v260_v5 = vld [vmem:[#allocation5 + $0xe8] sm:$0xff]  ;;  %288 = vmatpush.msra.mxu1 %v262_v2  ;;  %v243_v6 = vld [vmem:[#allocation5 + $0x60] sm:$0xff]  ;;  %v242_v8 = vld [vmem:[#allocation5 + $0x58] sm:$0xff]  ;;  %s326_s4 = sshll.u32 %s224_s29, 4  ;;  %s328_s5 = sshll.u32 %s325_s28, 4  ;;  %s327_s4 = int_to_ptr.vmem [resolvable:$true] %s326_s4  ;;  %s329_s5 = int_to_ptr.hbm [resolvable:$true] %s328_s5 }
  0x34   : > { %444 = vmatpush.msra.mxu2 %v245_v1  ;;  %266 = vmatpush.msra.mxu0 %v245_v1  ;;  %v259_v7 = vld [vmem:[#allocation5 + $0xe0] sm:$0xff]  ;;  %v258_v9 = vld [vmem:[#allocation5 + $0xd8] sm:$0xff]  ;;  %v241_v10 = vld [vmem:[#allocation5 + $0x50] sm:$0xff]  ;;  %s314_s16 = scalar_lea.sflag [#allocation4], %s834_s22  ;;  %s652_s7 = sshra.s32 %s329_s5, 4  ;;  %s653_s7 = int_to_ptr.hbm [resolvable:$true] %s652_s7 }
  0x35   : > { %460 = vmatpush.msra.mxu3 %v261_v3  ;;  %289 = vmatpush.msra.mxu1 %v261_v3  ;;  %v257_v11 = vld [vmem:[#allocation5 + $0xd0] sm:$0xff]  ;;  %v240_v12 = vld [vmem:[#allocation5 + $0x48] sm:$0xff]  ;;  %v239_v14 = vld [vmem:[#allocation5 + $0x40] sm:$0xff]  ;;  %s654_s8 = scalar_lea.hbm %s653_s7, 16  ;;  %s658_s11 = scalar_lea.hbm %s889_s3, 32 }
  0x36   : > { %445 = vmatpush.msra.mxu2 %v244_v4  ;;  %267 = vmatpush.msra.mxu0 %v244_v4  ;;  %v256_v13 = vld [vmem:[#allocation5 + $0xc8] sm:$0xff]  ;;  %v255_v15 = vld [vmem:[#allocation5 + $0xc0] sm:$0xff]  ;;  %v238_v16 = vld [vmem:[#allocation5 + $0x38] sm:$0xff]  ;;  %p655_p1 = scmp.ne.s32.totalorder %s653_s7, %s654_s8  ;;  %p659_p11 = scmp.lt.s32.totalorder %s653_s7, %s889_s3 }
  0x37   : > { %461 = vmatpush.msra.mxu3 %v260_v5  ;;  %290 = vmatpush.msra.mxu1 %v260_v5  ;;  %v254_v17 = vld [vmem:[#allocation5 + $0xb8] sm:$0xff]  ;;  %v237_v18 = vld [vmem:[#allocation5 + $0x30] sm:$0xff]  ;;  %v236_v20 = vld [vmem:[#allocation5 + $0x28] sm:$0xff]  ;;  %p660_p2 = scmp.lt.s32.totalorder %s658_s11, %s654_s8 }
  0x38   : > { %446 = vmatpush.msra.mxu2 %v243_v6  ;;  %268 = vmatpush.msra.mxu0 %v243_v6  ;;  %v253_v19 = vld [vmem:[#allocation5 + $0xb0] sm:$0xff]  ;;  %v252_v21 = vld [vmem:[#allocation5 + $0xa8] sm:$0xff]  ;;  %v235_v22 = vld [vmem:[#allocation5 + $0x20] sm:$0xff]  ;;  %p656_p4 = pnand %p655_p1, %p804_p3 }
  0x39   : > { %462 = vmatpush.msra.mxu3 %v259_v7  ;;  %291 = vmatpush.msra.mxu1 %v259_v7  ;;  %v251_v23 = vld [vmem:[#allocation5 + $0xa0] sm:$0xff]  ;;  %v234_v24 = vld [vmem:[#allocation5 + $0x18] sm:$0xff]  ;;  %v233_v26 = vld [vmem:[#allocation5 + $0x10] sm:$0xff]  ;;  %p661_p9 = por %p660_p2, %p659_p11 }
  0x3a   : > { %447 = vmatpush.msra.mxu2 %v242_v8  ;;  %269 = vmatpush.msra.mxu0 %v242_v8  ;;  %v250_v25 = vld [vmem:[#allocation5 + $0x98] sm:$0xff]  ;;  %v249_v27 = vld [vmem:[#allocation5 + $0x90] sm:$0xff]  ;;  %v232_v28 = vld [vmem:[#allocation5 + $0x8] sm:$0xff]  ;;  %p657_p8 = pneg %p656_p4 }
  0x3b   : > { %463 = vmatpush.msra.mxu3 %v258_v9  ;;  %292 = vmatpush.msra.mxu1 %v258_v9  ;;  %v248_v29 = vld [vmem:[#allocation5 + $0x88] sm:$0xff]  ;;  %v231_v30 = vld [vmem:[#allocation5] sm:$0xff]  ;;  %v229_v32 = vld [vmem:[%s838_s30 + $0x10] sm:$0xff] }
  0x3c   : > { %448 = vmatpush.msra.mxu2 %v241_v10  ;;  %270 = vmatpush.msra.mxu0 %v241_v10  ;;  %v247_v31 = vld [vmem:[#allocation5 + $0x80] sm:$0xff]  ;;  %v230_v33 = vld [vmem:[%s838_s30 + $0x18] sm:$0xff]  ;;  %v228_v35 = vld [vmem:[%s838_s30 + $0x8] sm:$0xff]  ;;  %p662_p10 = pnand %p661_p9, %p657_p8 }
  0x3d   : > { %464 = vmatpush.msra.mxu3 %v257_v11  ;;  %293 = vmatpush.msra.mxu1 %v257_v11  ;;  %v227_v34 = vld [vmem:[%s838_s30] sm:$0xff]  ;;  %v264_v40 = vld [vmem:[#allocation7 + $0x8] sm:$0xff] }
  0x3e   : > { %449 = vmatpush.msra.mxu2 %v240_v12  ;;  %271 = vmatpush.msra.mxu0 %v240_v12  ;;  %v263_v36 = vld [vmem:[#allocation7] sm:$0xff] }
  0x3f   : > { %465 = vmatpush.msra.mxu3 %v256_v13  ;;  %294 = vmatpush.msra.mxu1 %v256_v13 }
  0x40   : > { %450 = vmatpush.msra.mxu2 %v239_v14  ;;  %272 = vmatpush.msra.mxu0 %v239_v14 }
  0x41   : > { %466 = vmatpush.msra.mxu3 %v255_v15  ;;  %295 = vmatpush.msra.mxu1 %v255_v15 }
  0x42   : > { %451 = vmatpush.msra.mxu2 %v238_v16  ;;  %273 = vmatpush.msra.mxu0 %v238_v16 }
  0x43   : > { %467 = vmatpush.msra.mxu3 %v254_v17  ;;  %296 = vmatpush.msra.mxu1 %v254_v17 }
  0x44   : > { %452 = vmatpush.msra.mxu2 %v237_v18  ;;  %274 = vmatpush.msra.mxu0 %v237_v18 }
  0x45   : > { %468 = vmatpush.msra.mxu3 %v253_v19  ;;  %297 = vmatpush.msra.mxu1 %v253_v19 }
  0x46   : > { %453 = vmatpush.msra.mxu2 %v236_v20  ;;  %275 = vmatpush.msra.mxu0 %v236_v20 }
  0x47   : > { %469 = vmatpush.msra.mxu3 %v252_v21  ;;  %298 = vmatpush.msra.mxu1 %v252_v21 }
  0x48   : > { %454 = vmatpush.msra.mxu2 %v235_v22  ;;  %276 = vmatpush.msra.mxu0 %v235_v22 }
  0x49   : > { %470 = vmatpush.msra.mxu3 %v251_v23  ;;  %299 = vmatpush.msra.mxu1 %v251_v23 }
  0x4a   : > { %455 = vmatpush.msra.mxu2 %v234_v24  ;;  %277 = vmatpush.msra.mxu0 %v234_v24 }
  0x4b   : > { %471 = vmatpush.msra.mxu3 %v250_v25  ;;  %300 = vmatpush.msra.mxu1 %v250_v25 }
  0x4c   : > { %456 = vmatpush.msra.mxu2 %v233_v26  ;;  %278 = vmatpush.msra.mxu0 %v233_v26 }
  0x4d   : > { %472 = vmatpush.msra.mxu3 %v249_v27  ;;  %301 = vmatpush.msra.mxu1 %v249_v27 }
  0x4e   : > { %457 = vmatpush.msra.mxu2 %v232_v28  ;;  %279 = vmatpush.msra.mxu0 %v232_v28 }
  0x4f   : > { %473 = vmatpush.msra.mxu3 %v248_v29  ;;  %302 = vmatpush.msra.mxu1 %v248_v29 }
  0x50   : > { %458 = vmatpush.msra.mxu2 %v231_v30  ;;  %280 = vmatpush.msra.mxu0 %v231_v30 }
  0x51   : > { %474 = vmatpush.msra.mxu3 %v247_v31  ;;  %284 = vmatmul.f32.vlgmr.msra.gmra.mxu2 %v229_v32 }
  0x52   : > { %307 = vmatmul.f32.vlgmr.msra.gmra.mxu3 %v230_v33  ;;  %303 = vmatpush.msra.mxu1 %v247_v31 }
  0x53   : > { %281 = vmatmul.f32.vlgmr.msra.gmra.mxu0 %v227_v34  ;;  %304 = vmatmul.f32.vlgmr.msra.gmra.mxu1 %v228_v35 }
  0xd0   : > { %v282_v37 = vpop.f32.mrf.mxu0  ;;  %v305_v38 = vpop.f32.mrf.mxu1 }
  0xd1   : > { %v283_v39 = vadd.f32 %v282_v37, %v263_v36 }
  0xd3   : > { %v306_v41 = vadd.f32 %v305_v38, %v283_v39 }
  0xd4   : > { %v285_v42 = vpop.f32.mrf.mxu2 }
  0xd5   : > { %v308_v43 = vpop.f32.mrf.mxu3  ;;  %v286_v44 = vadd.f32 %v285_v42, %v264_v40  ;;  %311 = vst [vmem:[%s224_s29] sm:$0xff] %v306_v41 }
  0xd7   : > { %v309_v45 = vadd.f32 %v308_v43, %v286_v44 }
  0xd9   : > { %312 = vst [vmem:[%s224_s29 + $0x8] sm:$0xff] %v309_v45 }
  0xda   : > { %665 = shalt.err (!%p662_p10)
}
  0xdb   : > { %s716_s22 = smov 128   ;;  %s717_s25 = smov 8  }
  0xdc   : > { %485 = dma.vmem_to_hbm [thread:$0]  (%p804_p3), %s327_s4, 256, %s329_s5, %s314_s16, %s716_s22, %s716_s22, %s717_s25  }
  0xdd PF: > { %s343_s30 = sand.u32 1, %s696_s12   ;;  %p895_p12 = scmp.ge.s32.totalorder %s708_s15, 2 }
  0xde   : > { %s344_s18 = scalar_lea.sflag [#allocation4], %s343_s30 }
  0xdf   : > { %p499_p13 = pnand %p895_p12, %p773_p6 }
  0xe1   : > { %p500_p0 = pneg %p499_p13 }
  0xe3   : > { %691 = dma.done.wait (%p500_p0), %s344_s18, 256  }
  0xe4   : > { %693 = vsyncadd (%p500_p0), %s344_s18, 4294967040  ;;  %p17_p5 = scmp.ge.s32.totalorder %s794_s6, 4   ;;  %s896_s12 = smov %s700_s13 }
  0xe5   : > { %s897_s13 = smov %s704_s14  ;;  %s898_s14 = smov %s810_s10 }
  0xe6   : > { %s899_s15 = smov %s794_s6  ;;  %19 = sbr.rel (!%p17_p5) target bundleno = 6 (0x6), region = 85 }
  0xeb   :  { %350 = vsyncpa [#allocation3], 1 }
  0xec   :  { %352 = vsyncpa [#allocation3 + $0x1], 1 }
  0xed   :  { %353 = vsyncpa [#allocation6], 1 }
  0xee   :  { %354 = vsyncpa [#allocation4], 1 }
  0xef   :  { %356 = vsyncpa [#allocation4 + $0x1], 1 }

</bundles_post_ra>
